<compile_context>
chip_gen: v6e
topology: v6e:2x2x1
jax: 0.10.0
libtpu: 0.0.40
codegen_flags: <defaults>
</compile_context>

<pallas_src>
import math

import jax
import jax.numpy as jnp
from jax.experimental import pallas as pl
from jax.experimental.pallas import tpu as pltpu


def _round_up(x, m):
    return ((x + m - 1) // m) * m


def _num_tensorcores_per_chip():
    """Best-effort TC-per-chip count (v7x has 2; earlier generations have 1)."""
    try:
        d = jax.devices()[0]
        if d.platform != "tpu":
            return 1
        kind = (getattr(d, "device_kind", "") or "").lower()
        if "v7" in kind:
            return 2
        nc = getattr(d, "num_cores", None)
        if isinstance(nc, int) and nc > 0:
            return nc
        return 1
    except Exception:
        return 1


def _rgcn_kernel(h_ref, w_ref, b_ref, o_ref):
    # h_ref : (TM, F_in)    tile of node features (f32 or bf16), streamed
    # w_ref : (F_in, F_out) fused self-loop weight (loop_weight + I), resident
    # b_ref : (1, F_out)    bias row (f32), resident
    # o_ref : (TM, F_out)   output tile
    #
    # relu(h @ (W + I) + bias)  ==  relu(h + bias + h @ W), f32 accumulation.
    acc = jnp.dot(h_ref[...], w_ref[...], preferred_element_type=jnp.float32)
    acc = acc + b_ref[...]
    o_ref[...] = jnp.maximum(acc, 0.0).astype(o_ref.dtype)


def rgcn_layer_forward(h, loop_weight, bias, *, tm=None, out_dtype=None):
    """Fused RGCNLayer forward: relu(h + bias + h @ loop_weight).

    tm: row (node) tile.  If None, sized from a ~2 MiB per-step byte target
        (4096 rows at F=128 f32), clamped to [256, 4096] and aligned to the
        dtype sublane packing.  On v7x it is additionally capped so the grid
        has at least 2 steps (one per TensorCore).
    out_dtype: output dtype (defaults to h.dtype); pass bf16 to halve writeback.
    """
    N, F_in = h.shape
    K, F_out = loop_weight.shape
    assert K == F_in, "loop_weight must be (in_feat, out_feat)"
    # propagate() is treated as identity, so the residual add requires in==out.
    assert F_in == F_out, "base-class RGCNLayer with identity propagate needs in_feat == out_feat"

    out_dtype = out_dtype or h.dtype

    # Fold the identity-propagate residual into the weight: W' = W + I (done in
    # f32, then cast back to the weight's streaming dtype).
    w_fused = (loop_weight.astype(jnp.float32)
               + jnp.eye(F_in, dtype=jnp.float32)).astype(loop_weight.dtype)
    bias2d = bias.reshape(1, F_out).astype(jnp.float32)

    # Sublane alignment for the row tile depends on dtype packing:
    # f32 -> 8, bf16/f16 -> 16, int8/fp8 -> 32.
    h_itemsize = jnp.dtype(h.dtype).itemsize
    row_align = {4: 8, 2: 16, 1: 32}.get(h_itemsize, 8)

    if tm is None:
        # ~2 MiB of h per grid step, MXU-/alignment-friendly, clamped.
        tm = (2 * 1024 * 1024) // max(1, F_in * h_itemsize)
        tm = min(max(tm, 256), 4096)
    tm = max(row_align, _round_up(tm, 256))

    # Never larger than the (alignment-rounded) node count.
    tm_eff = min(tm, _round_up(N, row_align))
    # v7x: keep >= 2 grid steps so both TensorCores get work.
    if _num_tensorcores_per_chip() >= 2 and N > row_align:
        tm_half = max(row_align, _round_up(pl.cdiv(N, 2), row_align))
        tm_eff = min(tm_eff, tm_half)
    tm_eff = max(row_align, _round_up(tm_eff, row_align))

    grid = (pl.cdiv(N, tm_eff),)

    # VMEM budget: double-buffered h tile + out tile, resident weight + bias.
    out_itemsize = jnp.dtype(out_dtype).itemsize
    w_itemsize = jnp.dtype(w_fused.dtype).itemsize
    vmem_need = (2 * tm_eff * F_in * h_itemsize
                 + 2 * tm_eff * F_out * out_itemsize
                 + 2 * F_in * F_out * w_itemsize
                 + 2 * F_out * 4)
    vmem_limit = int(min(48 * 1024 * 1024,
                         max(32 * 1024 * 1024, int(vmem_need * 1.5))))

    out = pl.pallas_call(
        _rgcn_kernel,
        out_shape=jax.ShapeDtypeStruct((N, F_out), out_dtype),
        grid=grid,
        in_specs=[
            pl.BlockSpec((tm_eff, F_in), lambda i: (i, 0)),   # h tile (streamed)
            pl.BlockSpec((F_in, F_out), lambda i: (0, 0)),    # fused weight (resident)
            pl.BlockSpec((1, F_out), lambda i: (0, 0)),       # bias row (resident)
        ],
        out_specs=pl.BlockSpec((tm_eff, F_out), lambda i: (i, 0)),
        compiler_params=pltpu.CompilerParams(
            dimension_semantics=("parallel",),
            vmem_limit_bytes=vmem_limit,
        ),
    )(h, w_fused, bias2d)
    return out


def _xavier_uniform(key, shape, gain):
    fan_in, fan_out = shape[0], shape[1]
    a = gain * math.sqrt(6.0 / (fan_in + fan_out))
    return jax.random.uniform(key, shape, jnp.float32, minval=-a, maxval=a)


if __name__ == "__main__":
    # Small shapes: N=777 nodes (non-tile-divisible -> exercises the ragged last
    # block and, on v7x, 2 grid steps), in_feat = out_feat = 128.
    N, F_in, F_out = 777, 128, 128
    key = jax.random.PRNGKey(0)
    k_h, k_w, k_b = jax.random.split(key, 3)

    gain = math.sqrt(2.0)  # nn.init.calculate_gain('relu')
    h = jax.random.normal(k_h, (N, F_in), jnp.float32)
    loop_weight = _xavier_uniform(k_w, (F_in, F_out), gain)
    # PyTorch applies xavier_uniform_ to a 1-D bias; emulate as a (1, F_out) fan.
    bias = _xavier_uniform(k_b, (1, F_out), gain).reshape(F_out)

    # Pure-JAX reference.
    ref = jnp.maximum(h + bias[None, :] + h @ loop_weight, 0.0)

    # f32 path (strict check).
    out = rgcn_layer_forward(h, loop_weight, bias)
    out = jax.block_until_ready(out)
    assert out.shape == (N, F_out)
    assert jnp.allclose(out, ref, atol=1e-4, rtol=1e-4)

    # bf16 streaming path (preferred on v5e; halves HBM traffic everywhere):
    # f32 accumulation in-kernel, loose tolerance vs the f32 reference.
    out_bf16 = rgcn_layer_forward(
        h.astype(jnp.bfloat16), loop_weight.astype(jnp.bfloat16), bias)
    out_bf16 = jax.block_until_ready(out_bf16)
    assert out_bf16.shape == (N, F_out)
    assert jnp.allclose(out_bf16.astype(jnp.float32), ref, atol=1e-1, rtol=1e-1)

    # f32 inputs, bf16 writeback (cuts output stream ~2x on a mem-bound kernel).
    out_mixed = rgcn_layer_forward(h, loop_weight, bias, out_dtype=jnp.bfloat16)
    out_mixed = jax.block_until_ready(out_mixed)
    assert out_mixed.shape == (N, F_out)
    assert jnp.allclose(out_mixed.astype(jnp.float32), ref, atol=1e-1, rtol=1e-1)

    print("KERNEL_OK")
</pallas_src>

<mosaic_0001>
module attributes {stable_mosaic.version = 11 : i64} {
  func.func @_rgcn_kernel(%arg0: i32, %arg1: memref<784x128xf32, #tpu.memory_space<vmem>>, %arg2: memref<128x128xf32, #tpu.memory_space<vmem>>, %arg3: memref<1x128xf32, #tpu.memory_space<vmem>>, %arg4: memref<784x128xf32, #tpu.memory_space<vmem>>) attributes {dimension_semantics = [#tpu.dimension_semantics<parallel>], iteration_bounds = array<i64: 1>, scalar_prefetch = 0 : i64, scratch_operands = 0 : i64, tpu.core_type = #tpu.core_type<tc>, window_params = [{transform_indices = @transform_0, window_bounds = array<i64: 784, 128>}, {pipeline_mode = #tpu.pipeline_mode<synchronous>, transform_indices = @transform_1, window_bounds = array<i64: 128, 128>}, {pipeline_mode = #tpu.pipeline_mode<synchronous>, transform_indices = @transform_2, window_bounds = array<i64: 1, 128>}, {transform_indices = @transform_3, window_bounds = array<i64: 784, 128>}]} {
    %c0 = arith.constant 0 : index
    %c0_0 = arith.constant 0 : index
    %0 = vector.load %arg1[%c0, %c0_0] : memref<784x128xf32, #tpu.memory_space<vmem>>, vector<784x128xf32>
    %c0_1 = arith.constant 0 : index
    %c0_2 = arith.constant 0 : index
    %1 = vector.load %arg2[%c0_1, %c0_2] : memref<128x128xf32, #tpu.memory_space<vmem>>, vector<128x128xf32>
    %cst = arith.constant dense<0.000000e+00> : vector<784x128xf32>
    %2 = tpu.matmul %0, %1, %cst {dimension_numbers = #tpu.dot_dimension_numbers<[1], [0], [0], [1], [0, 0, 1, 1], [], []>} : vector<784x128xf32>, vector<128x128xf32>, vector<784x128xf32> -> vector<784x128xf32>
    %c0_3 = arith.constant 0 : index
    %c0_4 = arith.constant 0 : index
    %3 = vector.load %arg3[%c0_3, %c0_4] : memref<1x128xf32, #tpu.memory_space<vmem>>, vector<1x128xf32>
    %4 = vector.broadcast %3 : vector<1x128xf32> to vector<784x128xf32>
    %5 = arith.addf %2, %4 : vector<784x128xf32>
    %cst_5 = arith.constant 0.000000e+00 : f32
    %6 = vector.broadcast %cst_5 : f32 to vector<784x128xf32>
    %7 = arith.maximumf %5, %6 : vector<784x128xf32>
    %c0_6 = arith.constant 0 : index
    %c0_7 = arith.constant 0 : index
    %8 = vector.load %arg4[%c0_6, %c0_7] : memref<784x128xf32, #tpu.memory_space<vmem>>, vector<784x128xf32>
    tpu.vector_store %arg4[%c0_6, %c0_7], %7 {strides = array<i32>} : memref<784x128xf32, #tpu.memory_space<vmem>>, vector<784x128xf32>,
    return
  }
  func.func @transform_0(%arg0: i32) -> (i32, i32) {
    %c0_i32 = arith.constant 0 : i32
    %c0_i32_0 = arith.constant 0 : i32
    return %arg0, %c0_i32 : i32, i32
  }
  func.func @transform_1(%arg0: i32) -> (i32, i32) {
    %c0_i32 = arith.constant 0 : i32
    %c0_i32_0 = arith.constant 0 : i32
    %c0_i32_1 = arith.constant 0 : i32
    return %c0_i32, %c0_i32_0 : i32, i32
  }
  func.func @transform_2(%arg0: i32) -> (i32, i32) {
    %c0_i32 = arith.constant 0 : i32
    %c0_i32_0 = arith.constant 0 : i32
    %c0_i32_1 = arith.constant 0 : i32
    return %c0_i32, %c0_i32_0 : i32, i32
  }
  func.func @transform_3(%arg0: i32) -> (i32, i32) {
    %c0_i32 = arith.constant 0 : i32
    %c0_i32_0 = arith.constant 0 : i32
    return %arg0, %c0_i32 : i32, i32
  }
}

</mosaic_0001>

<bundles_post_ra>
// kernel: tpu_custom_call.1
= control target key start
LH: loop header
LB: loop body
LE: loop exit
PB: predicated region body
PF: predicated region fallthrough
CT: control target
= control target key end

     0   :  { %8 = vsyncpa [#allocation3], 0  ;;  %s1476_s0 = inlined_call_operand.hbm [shape: f32[777,128], index: 0, kind: input, shape index: {}]   ;;  %s1477_s1 = inlined_call_operand.hbm [shape: f32[128,128], index: 1, kind: input, shape index: {}]   ;;  %s1478_s2 = inlined_call_operand.vmem [shape: f32[1,128], index: 2, kind: input, shape index: {}]   ;;  %s1479_s3 = inlined_call_operand.hbm [shape: f32[777,128], index: 3, kind: output, shape index: {}]  }
   0x1   :  { %9 = vsyncpa [#allocation6], 0 }
   0x2   :  { %10 = vsyncpa [#allocation4], 0  ;;  %s1330_s12 = smov [#allocation2]  }
   0x3   :  { %s16_s13 = sshll.u32 %s1330_s12, 4  ;;  %s17_s13 = int_to_ptr.vmem [resolvable:$true] %s16_s13 }
   0x4   :  { %s1272_s14 = scalar_lea.vmem %s17_s13, 12544  ;;  %p1277_p1 = scmp.lt.s32.totalorder %s17_s13, %s17_s13 }
   0x5   :  { %p1273_p0 = scmp.ne.s32.totalorder %s17_s13, %s1272_s14  ;;  %p1278_p2 = scmp.lt.s32.totalorder %s1272_s14, %s1272_s14 }
   0x7   :  { %p1279_p3 = por %p1278_p2, %p1277_p1 }
   0x9   :  { %p1280_p4 = pnand %p1279_p3, %p1273_p0 }
   0xb   :  { %1283 = shalt.err (!%p1280_p4)
}
   0xc   :  { %s1331_s15 = smov 128   ;;  %s1332_s16 = smov 8  }
   0xd   :  { %22 = dma.hbm_to_vmem [thread:$0]  %s1476_s0, 12544, %s17_s13, [#allocation3], %s1331_s15, %s1331_s15, %s1332_s16  }
   0xe   :  { %s1333_s19 = smov [#allocation5]  }
   0xf   :  { %s28_s20 = sshll.u32 %s1333_s19, 4  ;;  %s29_s20 = int_to_ptr.vmem [resolvable:$true] %s28_s20 }
  0x10   :  { %s1292_s21 = scalar_lea.vmem %s29_s20, 2048  ;;  %p1297_p6 = scmp.lt.s32.totalorder %s29_s20, %s29_s20 }
  0x11   :  { %p1293_p5 = scmp.ne.s32.totalorder %s29_s20, %s1292_s21  ;;  %p1298_p7 = scmp.lt.s32.totalorder %s1292_s21, %s1292_s21 }
  0x13   :  { %p1299_p8 = por %p1298_p7, %p1297_p6 }
  0x15   :  { %p1300_p9 = pnand %p1299_p8, %p1293_p5 }
  0x17   :  { %1303 = shalt.err (!%p1300_p9)
}
  0x18   :  { %34 = dma.hbm_to_vmem [thread:$0]  %s1477_s1, 2048, %s29_s20, [#allocation6], %s1331_s15, %s1331_s15, %s1332_s16  }
  0x19   :  { %1324 = dma.done.wait [#allocation3], 12544  }
  0x1a   :  { %1325 = vsyncadd [#allocation3], 4294954752 }
  0x1b   :  { %1326 = dma.done.wait [#allocation6], 2048  }
  0x1c   :  { %1327 = vsyncadd [#allocation6], 4294965248  ;;  %v156_v0 = vld [vmem:[#allocation5 + $0x78] sm:$0xff]  ;;  %v155_v1 = vld [vmem:[#allocation5 + $0x70] sm:$0xff] }
  0x1d   :  { %1048 = vmatprep.subr.mxu0 %v156_v0  ;;  %1227 = vmatprep.subr.mxu1 %v156_v0  ;;  %v154_v2 = vld [vmem:[#allocation5 + $0x68] sm:$0xff]  ;;  %v153_v3 = vld [vmem:[#allocation5 + $0x60] sm:$0xff]  ;;  %v152_v4 = vld [vmem:[#allocation5 + $0x58] sm:$0xff] }
  0x1e   :  { %1049 = vmatpush3.msra.mxu0 %v156_v0  ;;  %1243 = vmatpush3.msra.mxu1 %v156_v0  ;;  %v151_v5 = vld [vmem:[#allocation5 + $0x50] sm:$0xff]  ;;  %v150_v6 = vld [vmem:[#allocation5 + $0x48] sm:$0xff]  ;;  %v149_v7 = vld [vmem:[#allocation5 + $0x40] sm:$0xff] }
  0x1f   :  { %1050 = vmatprep.subr.mxu0 %v155_v1  ;;  %1228 = vmatprep.subr.mxu1 %v155_v1  ;;  %v148_v8 = vld [vmem:[#allocation5 + $0x38] sm:$0xff]  ;;  %v147_v9 = vld [vmem:[#allocation5 + $0x30] sm:$0xff]  ;;  %v146_v10 = vld [vmem:[#allocation5 + $0x28] sm:$0xff] }
  0x20   :  { %1051 = vmatpush3.msra.mxu0 %v155_v1  ;;  %1244 = vmatpush3.msra.mxu1 %v155_v1  ;;  %v145_v11 = vld [vmem:[#allocation5 + $0x20] sm:$0xff]  ;;  %v144_v12 = vld [vmem:[#allocation5 + $0x18] sm:$0xff]  ;;  %v143_v13 = vld [vmem:[#allocation5 + $0x10] sm:$0xff] }
  0x21   :  { %1052 = vmatprep.subr.mxu0 %v154_v2  ;;  %1229 = vmatprep.subr.mxu1 %v154_v2  ;;  %v142_v14 = vld [vmem:[#allocation5 + $0x8] sm:$0xff]  ;;  %v141_v15 = vld [vmem:[#allocation5] sm:$0xff]  ;;  %v43_v16 = vld [vmem:[#allocation2] sm:$0xff] }
  0x22   :  { %1053 = vmatpush3.msra.mxu0 %v154_v2  ;;  %1245 = vmatpush3.msra.mxu1 %v154_v2  ;;  %v44_v17 = vld [vmem:[#allocation2 + $0x8] sm:$0xff]  ;;  %v93_v18 = vld [vmem:[#allocation2 + $0x190] sm:$0xff]  ;;  %v94_v20 = vld [vmem:[#allocation2 + $0x198] sm:$0xff] }
  0x23   :  { %1054 = vmatprep.subr.mxu0 %v153_v3  ;;  %1230 = vmatprep.subr.mxu1 %v153_v3  ;;  %v45_v19 = vld [vmem:[#allocation2 + $0x10] sm:$0xff]  ;;  %v95_v21 = vld [vmem:[#allocation2 + $0x1a0] sm:$0xff]  ;;  %v46_v22 = vld [vmem:[#allocation2 + $0x18] sm:$0xff] }
  0x24   :  { %1055 = vmatpush3.msra.mxu0 %v153_v3  ;;  %1246 = vmatpush3.msra.mxu1 %v153_v3  ;;  %v47_v23 = vld [vmem:[#allocation2 + $0x20] sm:$0xff]  ;;  %v96_v24 = vld [vmem:[#allocation2 + $0x1a8] sm:$0xff]  ;;  %v97_v25 = vld [vmem:[#allocation2 + $0x1b0] sm:$0xff] }
  0x25   :  { %1056 = vmatprep.subr.mxu0 %v152_v4  ;;  %1231 = vmatprep.subr.mxu1 %v152_v4  ;;  %v48_v26 = vld [vmem:[#allocation2 + $0x28] sm:$0xff]  ;;  %v49_v27 = vld [vmem:[#allocation2 + $0x30] sm:$0xff]  ;;  %v98_v28 = vld [vmem:[#allocation2 + $0x1b8] sm:$0xff] }
  0x26   :  { %1057 = vmatpush3.msra.mxu0 %v152_v4  ;;  %1247 = vmatpush3.msra.mxu1 %v152_v4  ;;  %v99_v29 = vld [vmem:[#allocation2 + $0x1c0] sm:$0xff]  ;;  %v50_v30 = vld [vmem:[#allocation2 + $0x38] sm:$0xff]  ;;  %v100_v32 = vld [vmem:[#allocation2 + $0x1c8] sm:$0xff] }
  0x27   :  { %1058 = vmatprep.subr.mxu0 %v151_v5  ;;  %1232 = vmatprep.subr.mxu1 %v151_v5  ;;  %v51_v31 = vld [vmem:[#allocation2 + $0x40] sm:$0xff]  ;;  %v101_v33 = vld [vmem:[#allocation2 + $0x1d0] sm:$0xff]  ;;  %v52_v34 = vld [vmem:[#allocation2 + $0x48] sm:$0xff] }
  0x28   :  { %1059 = vmatpush3.msra.mxu0 %v151_v5  ;;  %1248 = vmatpush3.msra.mxu1 %v151_v5  ;;  %v53_v35 = vld [vmem:[#allocation2 + $0x50] sm:$0xff]  ;;  %v102_v36 = vld [vmem:[#allocation2 + $0x1d8] sm:$0xff]  ;;  %v103_v37 = vld [vmem:[#allocation2 + $0x1e0] sm:$0xff] }
  0x29   :  { %1060 = vmatprep.subr.mxu0 %v150_v6  ;;  %1233 = vmatprep.subr.mxu1 %v150_v6  ;;  %v54_v38 = vld [vmem:[#allocation2 + $0x58] sm:$0xff]  ;;  %v55_v39 = vld [vmem:[#allocation2 + $0x60] sm:$0xff]  ;;  %v104_v40 = vld [vmem:[#allocation2 + $0x1e8] sm:$0xff] }
  0x2a   :  { %1061 = vmatpush3.msra.mxu0 %v150_v6  ;;  %1249 = vmatpush3.msra.mxu1 %v150_v6  ;;  %v105_v41 = vld [vmem:[#allocation2 + $0x1f0] sm:$0xff]  ;;  %v56_v42 = vld [vmem:[#allocation2 + $0x68] sm:$0xff]  ;;  %v106_v44 = vld [vmem:[#allocation2 + $0x1f8] sm:$0xff] }
  0x2b   :  { %1062 = vmatprep.subr.mxu0 %v149_v7  ;;  %1234 = vmatprep.subr.mxu1 %v149_v7  ;;  %v57_v43 = vld [vmem:[#allocation2 + $0x70] sm:$0xff]  ;;  %v107_v45 = vld [vmem:[#allocation2 + $0x200] sm:$0xff]  ;;  %v58_v46 = vld [vmem:[#allocation2 + $0x78] sm:$0xff] }
  0x2c   :  { %1063 = vmatpush3.msra.mxu0 %v149_v7  ;;  %1250 = vmatpush3.msra.mxu1 %v149_v7  ;;  %v59_v47 = vld [vmem:[#allocation2 + $0x80] sm:$0xff]  ;;  %v108_v48 = vld [vmem:[#allocation2 + $0x208] sm:$0xff]  ;;  %v109_v49 = vld [vmem:[#allocation2 + $0x210] sm:$0xff] }
  0x2d   :  { %1064 = vmatprep.subr.mxu0 %v148_v8  ;;  %1235 = vmatprep.subr.mxu1 %v148_v8  ;;  %v60_v50 = vld [vmem:[#allocation2 + $0x88] sm:$0xff]  ;;  %v61_v51 = vld [vmem:[#allocation2 + $0x90] sm:$0xff]  ;;  %v110_v52 = vld [vmem:[#allocation2 + $0x218] sm:$0xff] }
  0x2e   :  { %1065 = vmatpush3.msra.mxu0 %v148_v8  ;;  %1251 = vmatpush3.msra.mxu1 %v148_v8  ;;  %v111_v53 = vld [vmem:[#allocation2 + $0x220] sm:$0xff]  ;;  %v62_v54 = vld [vmem:[#allocation2 + $0x98] sm:$0xff]  ;;  %v112_v56 = vld [vmem:[#allocation2 + $0x228] sm:$0xff] }
  0x2f   :  { %1066 = vmatprep.subr.mxu0 %v147_v9  ;;  %1236 = vmatprep.subr.mxu1 %v147_v9  ;;  %v63_v55 = vld [vmem:[#allocation2 + $0xa0] sm:$0xff]  ;;  %v113_v57 = vld [vmem:[#allocation2 + $0x230] sm:$0xff]  ;;  %v64_v58 = vld [vmem:[#allocation2 + $0xa8] sm:$0xff] }
  0x30   :  { %1067 = vmatpush3.msra.mxu0 %v147_v9  ;;  %1252 = vmatpush3.msra.mxu1 %v147_v9  ;;  %v65_v59 = vld [vmem:[#allocation2 + $0xb0] sm:$0xff]  ;;  %v114_v60 = vld [vmem:[#allocation2 + $0x238] sm:$0xff]  ;;  %v115_v61 = vld [vmem:[#allocation2 + $0x240] sm:$0xff] }
  0x31   :  { %1068 = vmatprep.subr.mxu0 %v146_v10  ;;  %1237 = vmatprep.subr.mxu1 %v146_v10  ;;  %v66_v62 = vld [vmem:[#allocation2 + $0xb8] sm:$0xff]  ;;  %v67_v63 = vld [vmem:[#allocation2 + $0xc0] sm:$0xff]  ;;  %v116_v0 = vld [vmem:[#allocation2 + $0x248] sm:$0xff] }
  0x32   :  { %1069 = vmatpush3.msra.mxu0 %v146_v10  ;;  %1253 = vmatpush3.msra.mxu1 %v146_v10  ;;  %v117_v1 = vld [vmem:[#allocation2 + $0x250] sm:$0xff]  ;;  %v68_v2 = vld [vmem:[#allocation2 + $0xc8] sm:$0xff]  ;;  %v118_v4 = vld [vmem:[#allocation2 + $0x258] sm:$0xff] }
  0x33   :  { %1070 = vmatprep.subr.mxu0 %v145_v11  ;;  %1238 = vmatprep.subr.mxu1 %v145_v11  ;;  %v69_v3 = vld [vmem:[#allocation2 + $0xd0] sm:$0xff]  ;;  %v119_v5 = vld [vmem:[#allocation2 + $0x260] sm:$0xff]  ;;  %v70_v6 = vld [vmem:[#allocation2 + $0xd8] sm:$0xff] }
  0x34   :  { %1071 = vmatpush3.msra.mxu0 %v145_v11  ;;  %1254 = vmatpush3.msra.mxu1 %v145_v11  ;;  %v71_v7 = vld [vmem:[#allocation2 + $0xe0] sm:$0xff]  ;;  %v120_v8 = vld [vmem:[#allocation2 + $0x268] sm:$0xff]  ;;  %v121_v9 = vld [vmem:[#allocation2 + $0x270] sm:$0xff] }
  0x35   :  { %1072 = vmatprep.subr.mxu0 %v144_v12  ;;  %1239 = vmatprep.subr.mxu1 %v144_v12  ;;  %v72_v10 = vld [vmem:[#allocation2 + $0xe8] sm:$0xff]  ;;  %v73_v11 = vld [vmem:[#allocation2 + $0xf0] sm:$0xff] }
  0x36   :  { %1073 = vmatpush3.msra.mxu0 %v144_v12  ;;  %1255 = vmatpush3.msra.mxu1 %v144_v12  ;;  %v122_v12 = vld [vmem:[#allocation2 + $0x278] sm:$0xff] }
  0x37   :  { %1074 = vmatprep.subr.mxu0 %v143_v13  ;;  %1240 = vmatprep.subr.mxu1 %v143_v13 }
  0x38   :  { %1075 = vmatpush3.msra.mxu0 %v143_v13  ;;  %1256 = vmatpush3.msra.mxu1 %v143_v13  ;;  %v123_v13 = vld [vmem:[#allocation2 + $0x280] sm:$0xff] }
  0x39   :  { %1076 = vmatprep.subr.mxu0 %v142_v14  ;;  %1241 = vmatprep.subr.mxu1 %v142_v14 }
  0x3a   :  { %1077 = vmatpush3.msra.mxu0 %v142_v14  ;;  %1257 = vmatpush3.msra.mxu1 %v142_v14  ;;  %v74_v14 = vld [vmem:[#allocation2 + $0xf8] sm:$0xff] }
  0x3b   :  { %1078 = vmatprep.subr.mxu0 %v141_v15  ;;  %1080 = vmatprep.mubr.f32.mxu0 %v43_v16  ;;  %v124_v16 = vld [vmem:[#allocation2 + $0x288] sm:$0xff] }
  0x3c   :  { %1079 = vmatpush3.msra.mxu0 %v141_v15  ;;  %1242 = vmatprep.subr.mxu1 %v141_v15 }
  0x3d   :  { %1081 = vmatmul.mubr.f32.vlgmr.msra.gmra.mxu0 %v44_v17  ;;  %1258 = vmatpush3.msra.mxu1 %v141_v15  ;;  %v75_v15 = vld [vmem:[#allocation2 + $0x100] sm:$0xff]  ;;  %v125_v17 = vld [vmem:[#allocation2 + $0x290] sm:$0xff] }
  0x3e   :  { %1155 = vmatprep.mubr.f32.mxu1 %v93_v18  ;;  %1083 = vmatprep.mubr.f32.mxu0 %v45_v19  ;;  %v76_v18 = vld [vmem:[#allocation2 + $0x108] sm:$0xff]  ;;  %v77_v19 = vld [vmem:[#allocation2 + $0x110] sm:$0xff] }
  0x3f   :  { %1156 = vmatmul.mubr.f32.vlgmr.msra.gmra.mxu1 %v94_v20  ;;  %v126_v20 = vld [vmem:[#allocation2 + $0x298] sm:$0xff] }
  0x40   :  { %1158 = vmatprep.mubr.f32.mxu1 %v95_v21  ;;  %v127_v21 = vld [vmem:[#allocation2 + $0x2a0] sm:$0xff] }
  0x41   :  { %1084 = vmatmul.mubr.f32.gmra.mxu0 %v46_v22  ;;  %v78_v22 = vld [vmem:[#allocation2 + $0x118] sm:$0xff] }
  0x42   :  { %1086 = vmatprep.mubr.f32.mxu0 %v47_v23  ;;  %v79_v23 = vld [vmem:[#allocation2 + $0x120] sm:$0xff] }
  0x43   :  { %1159 = vmatmul.mubr.f32.gmra.mxu1 %v96_v24  ;;  %v128_v24 = vld [vmem:[#allocation2 + $0x2a8] sm:$0xff] }
  0x44   :  { %1161 = vmatprep.mubr.f32.mxu1 %v97_v25  ;;  %v129_v25 = vld [vmem:[#allocation2 + $0x2b0] sm:$0xff] }
  0x45   :  { %1087 = vmatmul.mubr.f32.gmra.mxu0 %v48_v26  ;;  %v80_v26 = vld [vmem:[#allocation2 + $0x128] sm:$0xff] }
  0x46   :  { %1089 = vmatprep.mubr.f32.mxu0 %v49_v27  ;;  %v81_v27 = vld [vmem:[#allocation2 + $0x130] sm:$0xff] }
  0x47   :  { %1162 = vmatmul.mubr.f32.gmra.mxu1 %v98_v28  ;;  %v130_v28 = vld [vmem:[#allocation2 + $0x2b8] sm:$0xff] }
  0x48   :  { %1164 = vmatprep.mubr.f32.mxu1 %v99_v29  ;;  %v131_v29 = vld [vmem:[#allocation2 + $0x2c0] sm:$0xff] }
  0x49   :  { %1090 = vmatmul.mubr.f32.gmra.mxu0 %v50_v30  ;;  %v82_v30 = vld [vmem:[#allocation2 + $0x138] sm:$0xff] }
  0x4a   :  { %1092 = vmatprep.mubr.f32.mxu0 %v51_v31  ;;  %v83_v31 = vld [vmem:[#allocation2 + $0x140] sm:$0xff] }
  0x4b   :  { %1165 = vmatmul.mubr.f32.gmra.mxu1 %v100_v32  ;;  %v132_v32 = vld [vmem:[#allocation2 + $0x2c8] sm:$0xff] }
  0x4c   :  { %1167 = vmatprep.mubr.f32.mxu1 %v101_v33  ;;  %v133_v33 = vld [vmem:[#allocation2 + $0x2d0] sm:$0xff] }
  0x4d   :  { %1093 = vmatmul.mubr.f32.gmra.mxu0 %v52_v34  ;;  %v84_v34 = vld [vmem:[#allocation2 + $0x148] sm:$0xff] }
  0x4e   :  { %1095 = vmatprep.mubr.f32.mxu0 %v53_v35  ;;  %v85_v35 = vld [vmem:[#allocation2 + $0x150] sm:$0xff] }
  0x4f   :  { %1168 = vmatmul.mubr.f32.gmra.mxu1 %v102_v36  ;;  %v134_v36 = vld [vmem:[#allocation2 + $0x2d8] sm:$0xff] }
  0x50   :  { %1170 = vmatprep.mubr.f32.mxu1 %v103_v37  ;;  %v135_v37 = vld [vmem:[#allocation2 + $0x2e0] sm:$0xff] }
  0x51   :  { %1096 = vmatmul.mubr.f32.gmra.mxu0 %v54_v38  ;;  %v86_v38 = vld [vmem:[#allocation2 + $0x158] sm:$0xff] }
  0x52   :  { %1098 = vmatprep.mubr.f32.mxu0 %v55_v39  ;;  %v87_v39 = vld [vmem:[#allocation2 + $0x160] sm:$0xff] }
  0x53   :  { %1171 = vmatmul.mubr.f32.gmra.mxu1 %v104_v40  ;;  %v136_v40 = vld [vmem:[#allocation2 + $0x2e8] sm:$0xff] }
  0x54   :  { %1173 = vmatprep.mubr.f32.mxu1 %v105_v41  ;;  %v137_v41 = vld [vmem:[#allocation2 + $0x2f0] sm:$0xff] }
  0x55   :  { %1099 = vmatmul.mubr.f32.gmra.mxu0 %v56_v42  ;;  %v88_v42 = vld [vmem:[#allocation2 + $0x168] sm:$0xff] }
  0x56   :  { %1101 = vmatprep.mubr.f32.mxu0 %v57_v43  ;;  %v89_v43 = vld [vmem:[#allocation2 + $0x170] sm:$0xff] }
  0x57   :  { %1174 = vmatmul.mubr.f32.gmra.mxu1 %v106_v44  ;;  %v138_v44 = vld [vmem:[#allocation2 + $0x2f8] sm:$0xff] }
  0x58   :  { %1176 = vmatprep.mubr.f32.mxu1 %v107_v45  ;;  %v139_v45 = vld [vmem:[#allocation2 + $0x300] sm:$0xff] }
  0x59   :  { %1102 = vmatmul.mubr.f32.gmra.mxu0 %v58_v46  ;;  %v90_v46 = vld [vmem:[#allocation2 + $0x178] sm:$0xff] }
  0x5a   :  { %1104 = vmatprep.mubr.f32.mxu0 %v59_v47  ;;  %v91_v47 = vld [vmem:[#allocation2 + $0x180] sm:$0xff] }
  0x5b   :  { %1177 = vmatmul.mubr.f32.gmra.mxu1 %v108_v48  ;;  %v140_v48 = vld [vmem:[#allocation2 + $0x308] sm:$0xff] }
  0x5c   :  { %1179 = vmatprep.mubr.f32.mxu1 %v109_v49  ;;  %v92_v49 = vld [vmem:[#allocation2 + $0x188] sm:$0xff] }
  0x5d   :  { %1105 = vmatmul.mubr.f32.gmra.mxu0 %v60_v50  ;;  %v1370_v50 = vld [vmem:[%s1478_s2] ss:$0 sm:$0xff]  ;;  %s1334_s2 = smov [#allocation7]  }
  0x5e   :  { %1107 = vmatprep.mubr.f32.mxu0 %v61_v51  ;;  %s920_s24 = sshll.u32 %s1334_s2, 4  ;;  %s921_s24 = int_to_ptr.vmem [resolvable:$true] %s920_s24 }
  0x5f   :  { %1180 = vmatmul.mubr.f32.gmra.mxu1 %v110_v52  ;;  %s1304_s25 = scalar_lea.vmem %s921_s24, 12544  ;;  %p1309_p11 = scmp.lt.s32.totalorder %s921_s24, %s921_s24 }
  0x60   :  { %1182 = vmatprep.mubr.f32.mxu1 %v111_v53  ;;  %p1305_p10 = scmp.ne.s32.totalorder %s921_s24, %s1304_s25  ;;  %p1310_p12 = scmp.lt.s32.totalorder %s1304_s25, %s1304_s25 }
  0x61   :  { %1108 = vmatmul.mubr.f32.gmra.mxu0 %v62_v54 }
  0x62   :  { %1110 = vmatprep.mubr.f32.mxu0 %v63_v55  ;;  %p1311_p13 = por %p1310_p12, %p1309_p11 }
  0x63   :  { %1183 = vmatmul.mubr.f32.gmra.mxu1 %v112_v56 }
  0x64   :  { %1185 = vmatprep.mubr.f32.mxu1 %v113_v57  ;;  %p1312_p0 = pnand %p1311_p13, %p1305_p10 }
  0x65   :  { %1111 = vmatmul.mubr.f32.gmra.mxu0 %v64_v58 }
  0x66   :  { %1113 = vmatprep.mubr.f32.mxu0 %v65_v59 }
  0x67   :  { %1186 = vmatmul.mubr.f32.gmra.mxu1 %v114_v60 }
  0x68   :  { %1188 = vmatprep.mubr.f32.mxu1 %v115_v61 }
  0x69   :  { %1114 = vmatmul.mubr.f32.gmra.mxu0 %v66_v62 }
  0x6a   :  { %1116 = vmatprep.mubr.f32.mxu0 %v67_v63 }
  0x6b   :  { %1189 = vmatmul.mubr.f32.gmra.mxu1 %v116_v0 }
  0x6c   :  { %1191 = vmatprep.mubr.f32.mxu1 %v117_v1 }
  0x6d   :  { %1117 = vmatmul.mubr.f32.gmra.mxu0 %v68_v2 }
  0x6e   :  { %1119 = vmatprep.mubr.f32.mxu0 %v69_v3 }
  0x6f   :  { %1192 = vmatmul.mubr.f32.gmra.mxu1 %v118_v4 }
  0x70   :  { %1194 = vmatprep.mubr.f32.mxu1 %v119_v5 }
  0x71   :  { %1120 = vmatmul.mubr.f32.gmra.mxu0 %v70_v6 }
  0x72   :  { %1122 = vmatprep.mubr.f32.mxu0 %v71_v7 }
  0x73   :  { %1195 = vmatmul.mubr.f32.gmra.mxu1 %v120_v8 }
  0x74   :  { %1197 = vmatprep.mubr.f32.mxu1 %v121_v9 }
  0x75   :  { %1123 = vmatmul.mubr.f32.gmra.mxu0 %v72_v10 }
  0x76   :  { %1125 = vmatprep.mubr.f32.mxu0 %v73_v11 }
  0x77   :  { %1198 = vmatmul.mubr.f32.gmra.mxu1 %v122_v12 }
  0x78   :  { %1200 = vmatprep.mubr.f32.mxu1 %v123_v13 }
  0x79   :  { %1126 = vmatmul.mubr.f32.gmra.mxu0 %v74_v14 }
  0x7a   :  { %1128 = vmatprep.mubr.f32.mxu0 %v75_v15 }
  0x7b   :  { %1201 = vmatmul.mubr.f32.gmra.mxu1 %v124_v16 }
  0x7c   :  { %1203 = vmatprep.mubr.f32.mxu1 %v125_v17 }
  0x7d   :  { %1129 = vmatmul.mubr.f32.gmra.mxu0 %v76_v18 }
  0x7e   :  { %1131 = vmatprep.mubr.f32.mxu0 %v77_v19 }
  0x7f   :  { %1204 = vmatmul.mubr.f32.gmra.mxu1 %v126_v20 }
  0x80   :  { %1206 = vmatprep.mubr.f32.mxu1 %v127_v21 }
  0x81   :  { %1132 = vmatmul.mubr.f32.gmra.mxu0 %v78_v22 }
  0x82   :  { %1134 = vmatprep.mubr.f32.mxu0 %v79_v23 }
  0x83   :  { %1207 = vmatmul.mubr.f32.gmra.mxu1 %v128_v24 }
  0x84   :  { %1209 = vmatprep.mubr.f32.mxu1 %v129_v25 }
  0x85   :  { %1135 = vmatmul.mubr.f32.gmra.mxu0 %v80_v26 }
  0x86   :  { %1137 = vmatprep.mubr.f32.mxu0 %v81_v27 }
  0x87   :  { %1210 = vmatmul.mubr.f32.gmra.mxu1 %v130_v28 }
  0x88   :  { %1212 = vmatprep.mubr.f32.mxu1 %v131_v29 }
  0x89   :  { %1138 = vmatmul.mubr.f32.gmra.mxu0 %v82_v30 }
  0x8a   :  { %1140 = vmatprep.mubr.f32.mxu0 %v83_v31 }
  0x8b   :  { %1213 = vmatmul.mubr.f32.gmra.mxu1 %v132_v32 }
  0x8c   :  { %1215 = vmatprep.mubr.f32.mxu1 %v133_v33 }
  0x8d   :  { %1141 = vmatmul.mubr.f32.gmra.mxu0 %v84_v34 }
  0x8e   :  { %1143 = vmatprep.mubr.f32.mxu0 %v85_v35 }
  0x8f   :  { %1216 = vmatmul.mubr.f32.gmra.mxu1 %v134_v36 }
  0x90   :  { %1218 = vmatprep.mubr.f32.mxu1 %v135_v37 }
  0x91   :  { %1144 = vmatmul.mubr.f32.gmra.mxu0 %v86_v38 }
  0x92   :  { %1146 = vmatprep.mubr.f32.mxu0 %v87_v39 }
  0x93   :  { %1219 = vmatmul.mubr.f32.gmra.mxu1 %v136_v40 }
  0x94   :  { %1221 = vmatprep.mubr.f32.mxu1 %v137_v41 }
  0x95   :  { %1147 = vmatmul.mubr.f32.gmra.mxu0 %v88_v42 }
  0x96   :  { %1149 = vmatprep.mubr.f32.mxu0 %v89_v43 }
  0x97   :  { %1222 = vmatmul.mubr.f32.gmra.mxu1 %v138_v44 }
  0x98   :  { %1224 = vmatprep.mubr.f32.mxu1 %v139_v45 }
  0x99   :  { %1150 = vmatmul.mubr.f32.gmra.mxu0 %v90_v46 }
  0x9a   :  { %1152 = vmatprep.mubr.f32.mxu0 %v91_v47 }
  0x9b   :  { %1225 = vmatmul.mubr.f32.gmra.mxu1 %v140_v48 }
  0x9d   :  { %1153 = vmatmul.mubr.f32.gmra.mxu0 %v92_v49 }
  0xfd   :  { %v1082_v51 = vpop.f32.mrf.mxu0 }
  0xfe   :  { %v236_v52 = vadd.f32 %v1082_v51, %v1370_v50 }
  0xff   :  { %v230_v53 = vpop.f32.mrf.mxu0  ;;  %v1157_v54 = vpop.f32.mrf.mxu1 }
 0x100   :  { %v720_v55 = vmax.f32 %v236_v52, 0.0  ;;  %v231_v56 = vadd.f32 %v1370_v50, %v230_v53  ;;  %v486_v57 = vadd.f32 %v1157_v54, %v1370_v50 }
 0x101   :  { %v1085_v58 = vpop.f32.mrf.mxu0  ;;  %v480_v59 = vpop.f32.mrf.mxu1 }
 0x102   :  { %818 = vst [vmem:[#allocation7 + $0x8] sm:$0xff] %v720_v55  ;;  %v719_v60 = vmax.f32 %v231_v56, 0.0  ;;  %v770_v61 = vmax.f32 %v486_v57, 0.0  ;;  %v246_v62 = vadd.f32 %v1085_v58, %v1370_v50  ;;  %v481_v63 = vadd.f32 %v1370_v50, %v480_v59 }
 0x103   :  { %v240_v0 = vpop.f32.mrf.mxu0  ;;  %v1160_v1 = vpop.f32.mrf.mxu1 }
 0x104   :  { %817 = vst [vmem:[#allocation7] sm:$0xff] %v719_v60  ;;  %868 = vst [vmem:[#allocation7 + $0x198] sm:$0xff] %v770_v61  ;;  %v722_v2 = vmax.f32 %v246_v62, 0.0  ;;  %v769_v3 = vmax.f32 %v481_v63, 0.0  ;;  %v241_v4 = vadd.f32 %v1370_v50, %v240_v0  ;;  %v496_v5 = vadd.f32 %v1160_v1, %v1370_v50 }
 0x105   :  { %v1088_v6 = vpop.f32.mrf.mxu0  ;;  %v490_v7 = vpop.f32.mrf.mxu1 }
 0x106   :  { %820 = vst [vmem:[#allocation7 + $0x18] sm:$0xff] %v722_v2  ;;  %867 = vst [vmem:[#allocation7 + $0x190] sm:$0xff] %v769_v3  ;;  %v721_v8 = vmax.f32 %v241_v4, 0.0  ;;  %v772_v9 = vmax.f32 %v496_v5, 0.0  ;;  %v256_v10 = vadd.f32 %v1088_v6, %v1370_v50  ;;  %v491_v11 = vadd.f32 %v1370_v50, %v490_v7 }
 0x107   :  { %v250_v12 = vpop.f32.mrf.mxu0  ;;  %v1163_v13 = vpop.f32.mrf.mxu1 }
 0x108   :  { %819 = vst [vmem:[#allocation7 + $0x10] sm:$0xff] %v721_v8  ;;  %870 = vst [vmem:[#allocation7 + $0x1a8] sm:$0xff] %v772_v9  ;;  %v724_v14 = vmax.f32 %v256_v10, 0.0  ;;  %v771_v15 = vmax.f32 %v491_v11, 0.0  ;;  %v251_v16 = vadd.f32 %v1370_v50, %v250_v12  ;;  %v506_v17 = vadd.f32 %v1163_v13, %v1370_v50 }
 0x109   :  { %v1091_v18 = vpop.f32.mrf.mxu0  ;;  %v500_v19 = vpop.f32.mrf.mxu1 }
 0x10a   :  { %822 = vst [vmem:[#allocation7 + $0x28] sm:$0xff] %v724_v14  ;;  %869 = vst [vmem:[#allocation7 + $0x1a0] sm:$0xff] %v771_v15  ;;  %v723_v20 = vmax.f32 %v251_v16, 0.0  ;;  %v774_v21 = vmax.f32 %v506_v17, 0.0  ;;  %v266_v22 = vadd.f32 %v1091_v18, %v1370_v50  ;;  %v501_v23 = vadd.f32 %v1370_v50, %v500_v19 }
 0x10b   :  { %v260_v24 = vpop.f32.mrf.mxu0  ;;  %v1166_v25 = vpop.f32.mrf.mxu1 }
 0x10c   :  { %821 = vst [vmem:[#allocation7 + $0x20] sm:$0xff] %v723_v20  ;;  %872 = vst [vmem:[#allocation7 + $0x1b8] sm:$0xff] %v774_v21  ;;  %v726_v26 = vmax.f32 %v266_v22, 0.0  ;;  %v773_v27 = vmax.f32 %v501_v23, 0.0  ;;  %v261_v28 = vadd.f32 %v1370_v50, %v260_v24  ;;  %v516_v29 = vadd.f32 %v1166_v25, %v1370_v50 }
 0x10d   :  { %v1094_v30 = vpop.f32.mrf.mxu0  ;;  %v510_v31 = vpop.f32.mrf.mxu1 }
 0x10e   :  { %824 = vst [vmem:[#allocation7 + $0x38] sm:$0xff] %v726_v26  ;;  %871 = vst [vmem:[#allocation7 + $0x1b0] sm:$0xff] %v773_v27  ;;  %v725_v32 = vmax.f32 %v261_v28, 0.0  ;;  %v776_v33 = vmax.f32 %v516_v29, 0.0  ;;  %v276_v34 = vadd.f32 %v1094_v30, %v1370_v50  ;;  %v511_v35 = vadd.f32 %v1370_v50, %v510_v31 }
 0x10f   :  { %v270_v36 = vpop.f32.mrf.mxu0  ;;  %v1169_v37 = vpop.f32.mrf.mxu1 }
 0x110   :  { %823 = vst [vmem:[#allocation7 + $0x30] sm:$0xff] %v725_v32  ;;  %874 = vst [vmem:[#allocation7 + $0x1c8] sm:$0xff] %v776_v33  ;;  %v728_v38 = vmax.f32 %v276_v34, 0.0  ;;  %v775_v39 = vmax.f32 %v511_v35, 0.0  ;;  %v271_v40 = vadd.f32 %v1370_v50, %v270_v36  ;;  %v526_v41 = vadd.f32 %v1169_v37, %v1370_v50 }
 0x111   :  { %v1097_v42 = vpop.f32.mrf.mxu0  ;;  %v520_v43 = vpop.f32.mrf.mxu1 }
 0x112   :  { %826 = vst [vmem:[#allocation7 + $0x48] sm:$0xff] %v728_v38  ;;  %873 = vst [vmem:[#allocation7 + $0x1c0] sm:$0xff] %v775_v39  ;;  %v727_v44 = vmax.f32 %v271_v40, 0.0  ;;  %v778_v45 = vmax.f32 %v526_v41, 0.0  ;;  %v286_v46 = vadd.f32 %v1097_v42, %v1370_v50  ;;  %v521_v47 = vadd.f32 %v1370_v50, %v520_v43 }
 0x113   :  { %v280_v48 = vpop.f32.mrf.mxu0  ;;  %v1172_v49 = vpop.f32.mrf.mxu1 }
 0x114   :  { %825 = vst [vmem:[#allocation7 + $0x40] sm:$0xff] %v727_v44  ;;  %876 = vst [vmem:[#allocation7 + $0x1d8] sm:$0xff] %v778_v45  ;;  %v730_v51 = vmax.f32 %v286_v46, 0.0  ;;  %v777_v52 = vmax.f32 %v521_v47, 0.0  ;;  %v281_v53 = vadd.f32 %v1370_v50, %v280_v48  ;;  %v536_v54 = vadd.f32 %v1172_v49, %v1370_v50 }
 0x115   :  { %v1100_v55 = vpop.f32.mrf.mxu0  ;;  %v530_v56 = vpop.f32.mrf.mxu1 }
 0x116   :  { %828 = vst [vmem:[#allocation7 + $0x58] sm:$0xff] %v730_v51  ;;  %875 = vst [vmem:[#allocation7 + $0x1d0] sm:$0xff] %v777_v52  ;;  %v729_v57 = vmax.f32 %v281_v53, 0.0  ;;  %v780_v58 = vmax.f32 %v536_v54, 0.0  ;;  %v296_v59 = vadd.f32 %v1100_v55, %v1370_v50  ;;  %v531_v60 = vadd.f32 %v1370_v50, %v530_v56 }
 0x117   :  { %v290_v61 = vpop.f32.mrf.mxu0  ;;  %v1175_v62 = vpop.f32.mrf.mxu1 }
 0x118   :  { %827 = vst [vmem:[#allocation7 + $0x50] sm:$0xff] %v729_v57  ;;  %878 = vst [vmem:[#allocation7 + $0x1e8] sm:$0xff] %v780_v58  ;;  %v732_v63 = vmax.f32 %v296_v59, 0.0  ;;  %v779_v0 = vmax.f32 %v531_v60, 0.0  ;;  %v291_v1 = vadd.f32 %v1370_v50, %v290_v61  ;;  %v546_v2 = vadd.f32 %v1175_v62, %v1370_v50 }
 0x119   :  { %v1103_v3 = vpop.f32.mrf.mxu0  ;;  %v540_v4 = vpop.f32.mrf.mxu1 }
 0x11a   :  { %830 = vst [vmem:[#allocation7 + $0x68] sm:$0xff] %v732_v63  ;;  %877 = vst [vmem:[#allocation7 + $0x1e0] sm:$0xff] %v779_v0  ;;  %v731_v5 = vmax.f32 %v291_v1, 0.0  ;;  %v782_v6 = vmax.f32 %v546_v2, 0.0  ;;  %v306_v7 = vadd.f32 %v1103_v3, %v1370_v50  ;;  %v541_v8 = vadd.f32 %v1370_v50, %v540_v4 }
 0x11b   :  { %v300_v9 = vpop.f32.mrf.mxu0  ;;  %v1178_v10 = vpop.f32.mrf.mxu1 }
 0x11c   :  { %829 = vst [vmem:[#allocation7 + $0x60] sm:$0xff] %v731_v5  ;;  %880 = vst [vmem:[#allocation7 + $0x1f8] sm:$0xff] %v782_v6  ;;  %v734_v11 = vmax.f32 %v306_v7, 0.0  ;;  %v781_v12 = vmax.f32 %v541_v8, 0.0  ;;  %v301_v13 = vadd.f32 %v1370_v50, %v300_v9  ;;  %v556_v14 = vadd.f32 %v1178_v10, %v1370_v50 }
 0x11d   :  { %v1106_v15 = vpop.f32.mrf.mxu0  ;;  %v550_v16 = vpop.f32.mrf.mxu1 }
 0x11e   :  { %832 = vst [vmem:[#allocation7 + $0x78] sm:$0xff] %v734_v11  ;;  %879 = vst [vmem:[#allocation7 + $0x1f0] sm:$0xff] %v781_v12  ;;  %v733_v17 = vmax.f32 %v301_v13, 0.0  ;;  %v784_v18 = vmax.f32 %v556_v14, 0.0  ;;  %v316_v19 = vadd.f32 %v1106_v15, %v1370_v50  ;;  %v551_v20 = vadd.f32 %v1370_v50, %v550_v16 }
 0x11f   :  { %v310_v21 = vpop.f32.mrf.mxu0  ;;  %v1181_v22 = vpop.f32.mrf.mxu1 }
 0x120   :  { %831 = vst [vmem:[#allocation7 + $0x70] sm:$0xff] %v733_v17  ;;  %882 = vst [vmem:[#allocation7 + $0x208] sm:$0xff] %v784_v18  ;;  %v736_v23 = vmax.f32 %v316_v19, 0.0  ;;  %v783_v24 = vmax.f32 %v551_v20, 0.0  ;;  %v311_v25 = vadd.f32 %v1370_v50, %v310_v21  ;;  %v566_v26 = vadd.f32 %v1181_v22, %v1370_v50 }
 0x121   :  { %v1109_v27 = vpop.f32.mrf.mxu0  ;;  %v560_v28 = vpop.f32.mrf.mxu1 }
 0x122   :  { %834 = vst [vmem:[#allocation7 + $0x88] sm:$0xff] %v736_v23  ;;  %881 = vst [vmem:[#allocation7 + $0x200] sm:$0xff] %v783_v24  ;;  %v735_v29 = vmax.f32 %v311_v25, 0.0  ;;  %v786_v30 = vmax.f32 %v566_v26, 0.0  ;;  %v326_v31 = vadd.f32 %v1109_v27, %v1370_v50  ;;  %v561_v32 = vadd.f32 %v1370_v50, %v560_v28 }
 0x123   :  { %v320_v33 = vpop.f32.mrf.mxu0  ;;  %v1184_v34 = vpop.f32.mrf.mxu1 }
 0x124   :  { %833 = vst [vmem:[#allocation7 + $0x80] sm:$0xff] %v735_v29  ;;  %884 = vst [vmem:[#allocation7 + $0x218] sm:$0xff] %v786_v30  ;;  %v738_v35 = vmax.f32 %v326_v31, 0.0  ;;  %v785_v36 = vmax.f32 %v561_v32, 0.0  ;;  %v321_v37 = vadd.f32 %v1370_v50, %v320_v33  ;;  %v576_v38 = vadd.f32 %v1184_v34, %v1370_v50 }
 0x125   :  { %v1112_v39 = vpop.f32.mrf.mxu0  ;;  %v570_v40 = vpop.f32.mrf.mxu1 }
 0x126   :  { %836 = vst [vmem:[#allocation7 + $0x98] sm:$0xff] %v738_v35  ;;  %883 = vst [vmem:[#allocation7 + $0x210] sm:$0xff] %v785_v36  ;;  %v737_v41 = vmax.f32 %v321_v37, 0.0  ;;  %v788_v42 = vmax.f32 %v576_v38, 0.0  ;;  %v336_v43 = vadd.f32 %v1112_v39, %v1370_v50  ;;  %v571_v44 = vadd.f32 %v1370_v50, %v570_v40 }
 0x127   :  { %v330_v45 = vpop.f32.mrf.mxu0  ;;  %v1187_v46 = vpop.f32.mrf.mxu1 }
 0x128   :  { %835 = vst [vmem:[#allocation7 + $0x90] sm:$0xff] %v737_v41  ;;  %886 = vst [vmem:[#allocation7 + $0x228] sm:$0xff] %v788_v42  ;;  %v740_v47 = vmax.f32 %v336_v43, 0.0  ;;  %v787_v48 = vmax.f32 %v571_v44, 0.0  ;;  %v331_v49 = vadd.f32 %v1370_v50, %v330_v45  ;;  %v586_v51 = vadd.f32 %v1187_v46, %v1370_v50 }
 0x129   :  { %v1115_v52 = vpop.f32.mrf.mxu0  ;;  %v580_v53 = vpop.f32.mrf.mxu1 }
 0x12a   :  { %838 = vst [vmem:[#allocation7 + $0xa8] sm:$0xff] %v740_v47  ;;  %885 = vst [vmem:[#allocation7 + $0x220] sm:$0xff] %v787_v48  ;;  %v739_v54 = vmax.f32 %v331_v49, 0.0  ;;  %v790_v55 = vmax.f32 %v586_v51, 0.0  ;;  %v346_v56 = vadd.f32 %v1115_v52, %v1370_v50  ;;  %v581_v57 = vadd.f32 %v1370_v50, %v580_v53 }
 0x12b   :  { %v340_v58 = vpop.f32.mrf.mxu0  ;;  %v1190_v59 = vpop.f32.mrf.mxu1 }
 0x12c   :  { %837 = vst [vmem:[#allocation7 + $0xa0] sm:$0xff] %v739_v54  ;;  %888 = vst [vmem:[#allocation7 + $0x238] sm:$0xff] %v790_v55  ;;  %v742_v60 = vmax.f32 %v346_v56, 0.0  ;;  %v789_v61 = vmax.f32 %v581_v57, 0.0  ;;  %v341_v62 = vadd.f32 %v1370_v50, %v340_v58  ;;  %v596_v63 = vadd.f32 %v1190_v59, %v1370_v50 }
 0x12d   :  { %v1118_v0 = vpop.f32.mrf.mxu0  ;;  %v590_v1 = vpop.f32.mrf.mxu1 }
 0x12e   :  { %840 = vst [vmem:[#allocation7 + $0xb8] sm:$0xff] %v742_v60  ;;  %887 = vst [vmem:[#allocation7 + $0x230] sm:$0xff] %v789_v61  ;;  %v741_v2 = vmax.f32 %v341_v62, 0.0  ;;  %v792_v3 = vmax.f32 %v596_v63, 0.0  ;;  %v356_v4 = vadd.f32 %v1118_v0, %v1370_v50  ;;  %v591_v5 = vadd.f32 %v1370_v50, %v590_v1 }
 0x12f   :  { %v350_v6 = vpop.f32.mrf.mxu0  ;;  %v1193_v7 = vpop.f32.mrf.mxu1 }
 0x130   :  { %839 = vst [vmem:[#allocation7 + $0xb0] sm:$0xff] %v741_v2  ;;  %890 = vst [vmem:[#allocation7 + $0x248] sm:$0xff] %v792_v3  ;;  %v744_v8 = vmax.f32 %v356_v4, 0.0  ;;  %v791_v9 = vmax.f32 %v591_v5, 0.0  ;;  %v351_v10 = vadd.f32 %v1370_v50, %v350_v6  ;;  %v606_v11 = vadd.f32 %v1193_v7, %v1370_v50 }
 0x131   :  { %v1121_v12 = vpop.f32.mrf.mxu0  ;;  %v600_v13 = vpop.f32.mrf.mxu1 }
 0x132   :  { %842 = vst [vmem:[#allocation7 + $0xc8] sm:$0xff] %v744_v8  ;;  %889 = vst [vmem:[#allocation7 + $0x240] sm:$0xff] %v791_v9  ;;  %v743_v14 = vmax.f32 %v351_v10, 0.0  ;;  %v794_v15 = vmax.f32 %v606_v11, 0.0  ;;  %v366_v16 = vadd.f32 %v1121_v12, %v1370_v50  ;;  %v601_v17 = vadd.f32 %v1370_v50, %v600_v13 }
 0x133   :  { %v360_v18 = vpop.f32.mrf.mxu0  ;;  %v1196_v19 = vpop.f32.mrf.mxu1 }
 0x134   :  { %841 = vst [vmem:[#allocation7 + $0xc0] sm:$0xff] %v743_v14  ;;  %892 = vst [vmem:[#allocation7 + $0x258] sm:$0xff] %v794_v15  ;;  %v746_v20 = vmax.f32 %v366_v16, 0.0  ;;  %v793_v21 = vmax.f32 %v601_v17, 0.0  ;;  %v361_v22 = vadd.f32 %v1370_v50, %v360_v18  ;;  %v616_v23 = vadd.f32 %v1196_v19, %v1370_v50 }
 0x135   :  { %v1124_v24 = vpop.f32.mrf.mxu0  ;;  %v610_v25 = vpop.f32.mrf.mxu1 }
 0x136   :  { %844 = vst [vmem:[#allocation7 + $0xd8] sm:$0xff] %v746_v20  ;;  %891 = vst [vmem:[#allocation7 + $0x250] sm:$0xff] %v793_v21  ;;  %v745_v26 = vmax.f32 %v361_v22, 0.0  ;;  %v796_v27 = vmax.f32 %v616_v23, 0.0  ;;  %v376_v28 = vadd.f32 %v1124_v24, %v1370_v50  ;;  %v611_v29 = vadd.f32 %v1370_v50, %v610_v25 }
 0x137   :  { %v370_v30 = vpop.f32.mrf.mxu0  ;;  %v1199_v31 = vpop.f32.mrf.mxu1 }
 0x138   :  { %843 = vst [vmem:[#allocation7 + $0xd0] sm:$0xff] %v745_v26  ;;  %894 = vst [vmem:[#allocation7 + $0x268] sm:$0xff] %v796_v27  ;;  %v748_v32 = vmax.f32 %v376_v28, 0.0  ;;  %v795_v33 = vmax.f32 %v611_v29, 0.0  ;;  %v371_v34 = vadd.f32 %v1370_v50, %v370_v30  ;;  %v626_v35 = vadd.f32 %v1199_v31, %v1370_v50 }
 0x139   :  { %v1127_v36 = vpop.f32.mrf.mxu0  ;;  %v620_v37 = vpop.f32.mrf.mxu1 }
 0x13a   :  { %846 = vst [vmem:[#allocation7 + $0xe8] sm:$0xff] %v748_v32  ;;  %893 = vst [vmem:[#allocation7 + $0x260] sm:$0xff] %v795_v33  ;;  %v747_v38 = vmax.f32 %v371_v34, 0.0  ;;  %v798_v39 = vmax.f32 %v626_v35, 0.0  ;;  %v386_v40 = vadd.f32 %v1127_v36, %v1370_v50  ;;  %v621_v41 = vadd.f32 %v1370_v50, %v620_v37 }
 0x13b   :  { %v380_v42 = vpop.f32.mrf.mxu0  ;;  %v1202_v43 = vpop.f32.mrf.mxu1 }
 0x13c   :  { %845 = vst [vmem:[#allocation7 + $0xe0] sm:$0xff] %v747_v38  ;;  %896 = vst [vmem:[#allocation7 + $0x278] sm:$0xff] %v798_v39  ;;  %v750_v44 = vmax.f32 %v386_v40, 0.0  ;;  %v797_v45 = vmax.f32 %v621_v41, 0.0  ;;  %v381_v46 = vadd.f32 %v1370_v50, %v380_v42  ;;  %v636_v47 = vadd.f32 %v1202_v43, %v1370_v50 }
 0x13d   :  { %v1130_v48 = vpop.f32.mrf.mxu0  ;;  %v630_v49 = vpop.f32.mrf.mxu1 }
 0x13e   :  { %848 = vst [vmem:[#allocation7 + $0xf8] sm:$0xff] %v750_v44  ;;  %895 = vst [vmem:[#allocation7 + $0x270] sm:$0xff] %v797_v45  ;;  %v749_v51 = vmax.f32 %v381_v46, 0.0  ;;  %v800_v52 = vmax.f32 %v636_v47, 0.0  ;;  %v396_v53 = vadd.f32 %v1130_v48, %v1370_v50  ;;  %v631_v54 = vadd.f32 %v1370_v50, %v630_v49 }
 0x13f   :  { %v390_v55 = vpop.f32.mrf.mxu0  ;;  %v1205_v56 = vpop.f32.mrf.mxu1 }
 0x140   :  { %847 = vst [vmem:[#allocation7 + $0xf0] sm:$0xff] %v749_v51  ;;  %898 = vst [vmem:[#allocation7 + $0x288] sm:$0xff] %v800_v52  ;;  %v752_v57 = vmax.f32 %v396_v53, 0.0  ;;  %v799_v58 = vmax.f32 %v631_v54, 0.0  ;;  %v391_v59 = vadd.f32 %v1370_v50, %v390_v55  ;;  %v646_v60 = vadd.f32 %v1205_v56, %v1370_v50 }
 0x141   :  { %v1133_v61 = vpop.f32.mrf.mxu0  ;;  %v640_v62 = vpop.f32.mrf.mxu1 }
 0x142   :  { %850 = vst [vmem:[#allocation7 + $0x108] sm:$0xff] %v752_v57  ;;  %897 = vst [vmem:[#allocation7 + $0x280] sm:$0xff] %v799_v58  ;;  %v751_v63 = vmax.f32 %v391_v59, 0.0  ;;  %v802_v0 = vmax.f32 %v646_v60, 0.0  ;;  %v406_v1 = vadd.f32 %v1133_v61, %v1370_v50  ;;  %v641_v2 = vadd.f32 %v1370_v50, %v640_v62 }
 0x143   :  { %v400_v3 = vpop.f32.mrf.mxu0  ;;  %v1208_v4 = vpop.f32.mrf.mxu1 }
 0x144   :  { %849 = vst [vmem:[#allocation7 + $0x100] sm:$0xff] %v751_v63  ;;  %900 = vst [vmem:[#allocation7 + $0x298] sm:$0xff] %v802_v0  ;;  %v754_v5 = vmax.f32 %v406_v1, 0.0  ;;  %v801_v6 = vmax.f32 %v641_v2, 0.0  ;;  %v401_v7 = vadd.f32 %v1370_v50, %v400_v3  ;;  %v656_v8 = vadd.f32 %v1208_v4, %v1370_v50 }
 0x145   :  { %v1136_v9 = vpop.f32.mrf.mxu0  ;;  %v650_v10 = vpop.f32.mrf.mxu1 }
 0x146   :  { %852 = vst [vmem:[#allocation7 + $0x118] sm:$0xff] %v754_v5  ;;  %899 = vst [vmem:[#allocation7 + $0x290] sm:$0xff] %v801_v6  ;;  %v753_v11 = vmax.f32 %v401_v7, 0.0  ;;  %v804_v12 = vmax.f32 %v656_v8, 0.0  ;;  %v416_v13 = vadd.f32 %v1136_v9, %v1370_v50  ;;  %v651_v14 = vadd.f32 %v1370_v50, %v650_v10 }
 0x147   :  { %v410_v15 = vpop.f32.mrf.mxu0  ;;  %v1211_v16 = vpop.f32.mrf.mxu1 }
 0x148   :  { %851 = vst [vmem:[#allocation7 + $0x110] sm:$0xff] %v753_v11  ;;  %902 = vst [vmem:[#allocation7 + $0x2a8] sm:$0xff] %v804_v12  ;;  %v756_v17 = vmax.f32 %v416_v13, 0.0  ;;  %v803_v18 = vmax.f32 %v651_v14, 0.0  ;;  %v411_v19 = vadd.f32 %v1370_v50, %v410_v15  ;;  %v666_v20 = vadd.f32 %v1211_v16, %v1370_v50 }
 0x149   :  { %v1139_v21 = vpop.f32.mrf.mxu0  ;;  %v660_v22 = vpop.f32.mrf.mxu1 }
 0x14a   :  { %854 = vst [vmem:[#allocation7 + $0x128] sm:$0xff] %v756_v17  ;;  %901 = vst [vmem:[#allocation7 + $0x2a0] sm:$0xff] %v803_v18  ;;  %v755_v23 = vmax.f32 %v411_v19, 0.0  ;;  %v806_v24 = vmax.f32 %v666_v20, 0.0  ;;  %v426_v25 = vadd.f32 %v1139_v21, %v1370_v50  ;;  %v661_v26 = vadd.f32 %v1370_v50, %v660_v22 }
 0x14b   :  { %v420_v27 = vpop.f32.mrf.mxu0  ;;  %v1214_v28 = vpop.f32.mrf.mxu1 }
 0x14c   :  { %853 = vst [vmem:[#allocation7 + $0x120] sm:$0xff] %v755_v23  ;;  %904 = vst [vmem:[#allocation7 + $0x2b8] sm:$0xff] %v806_v24  ;;  %v758_v29 = vmax.f32 %v426_v25, 0.0  ;;  %v805_v30 = vmax.f32 %v661_v26, 0.0  ;;  %v421_v31 = vadd.f32 %v1370_v50, %v420_v27  ;;  %v676_v32 = vadd.f32 %v1214_v28, %v1370_v50 }
 0x14d   :  { %v1142_v33 = vpop.f32.mrf.mxu0  ;;  %v670_v34 = vpop.f32.mrf.mxu1 }
 0x14e   :  { %856 = vst [vmem:[#allocation7 + $0x138] sm:$0xff] %v758_v29  ;;  %903 = vst [vmem:[#allocation7 + $0x2b0] sm:$0xff] %v805_v30  ;;  %v757_v35 = vmax.f32 %v421_v31, 0.0  ;;  %v808_v36 = vmax.f32 %v676_v32, 0.0  ;;  %v436_v37 = vadd.f32 %v1142_v33, %v1370_v50  ;;  %v671_v38 = vadd.f32 %v1370_v50, %v670_v34 }
 0x14f   :  { %v430_v39 = vpop.f32.mrf.mxu0  ;;  %v1217_v40 = vpop.f32.mrf.mxu1 }
 0x150   :  { %855 = vst [vmem:[#allocation7 + $0x130] sm:$0xff] %v757_v35  ;;  %906 = vst [vmem:[#allocation7 + $0x2c8] sm:$0xff] %v808_v36  ;;  %v760_v41 = vmax.f32 %v436_v37, 0.0  ;;  %v807_v42 = vmax.f32 %v671_v38, 0.0  ;;  %v431_v43 = vadd.f32 %v1370_v50, %v430_v39  ;;  %v686_v44 = vadd.f32 %v1217_v40, %v1370_v50 }
 0x151   :  { %v1145_v45 = vpop.f32.mrf.mxu0  ;;  %v680_v46 = vpop.f32.mrf.mxu1 }
 0x152   :  { %858 = vst [vmem:[#allocation7 + $0x148] sm:$0xff] %v760_v41  ;;  %905 = vst [vmem:[#allocation7 + $0x2c0] sm:$0xff] %v807_v42  ;;  %v759_v47 = vmax.f32 %v431_v43, 0.0  ;;  %v810_v48 = vmax.f32 %v686_v44, 0.0  ;;  %v446_v49 = vadd.f32 %v1145_v45, %v1370_v50  ;;  %v681_v51 = vadd.f32 %v1370_v50, %v680_v46 }
 0x153   :  { %v440_v52 = vpop.f32.mrf.mxu0  ;;  %v1220_v53 = vpop.f32.mrf.mxu1 }
 0x154   :  { %857 = vst [vmem:[#allocation7 + $0x140] sm:$0xff] %v759_v47  ;;  %908 = vst [vmem:[#allocation7 + $0x2d8] sm:$0xff] %v810_v48  ;;  %v762_v54 = vmax.f32 %v446_v49, 0.0  ;;  %v809_v55 = vmax.f32 %v681_v51, 0.0  ;;  %v441_v56 = vadd.f32 %v1370_v50, %v440_v52  ;;  %v696_v57 = vadd.f32 %v1220_v53, %v1370_v50 }
 0x155   :  { %v1148_v58 = vpop.f32.mrf.mxu0  ;;  %v690_v59 = vpop.f32.mrf.mxu1 }
 0x156   :  { %860 = vst [vmem:[#allocation7 + $0x158] sm:$0xff] %v762_v54  ;;  %907 = vst [vmem:[#allocation7 + $0x2d0] sm:$0xff] %v809_v55  ;;  %v761_v60 = vmax.f32 %v441_v56, 0.0  ;;  %v812_v61 = vmax.f32 %v696_v57, 0.0  ;;  %v456_v62 = vadd.f32 %v1148_v58, %v1370_v50  ;;  %v691_v63 = vadd.f32 %v1370_v50, %v690_v59 }
 0x157   :  { %v450_v0 = vpop.f32.mrf.mxu0  ;;  %v1223_v1 = vpop.f32.mrf.mxu1 }
 0x158   :  { %859 = vst [vmem:[#allocation7 + $0x150] sm:$0xff] %v761_v60  ;;  %910 = vst [vmem:[#allocation7 + $0x2e8] sm:$0xff] %v812_v61  ;;  %v764_v2 = vmax.f32 %v456_v62, 0.0  ;;  %v811_v3 = vmax.f32 %v691_v63, 0.0  ;;  %v451_v4 = vadd.f32 %v1370_v50, %v450_v0  ;;  %v706_v5 = vadd.f32 %v1223_v1, %v1370_v50 }
 0x159   :  { %v1151_v6 = vpop.f32.mrf.mxu0  ;;  %v700_v7 = vpop.f32.mrf.mxu1 }
 0x15a   :  { %862 = vst [vmem:[#allocation7 + $0x168] sm:$0xff] %v764_v2  ;;  %909 = vst [vmem:[#allocation7 + $0x2e0] sm:$0xff] %v811_v3  ;;  %v763_v8 = vmax.f32 %v451_v4, 0.0  ;;  %v814_v9 = vmax.f32 %v706_v5, 0.0  ;;  %v466_v10 = vadd.f32 %v1151_v6, %v1370_v50  ;;  %v701_v11 = vadd.f32 %v1370_v50, %v700_v7 }
 0x15b   :  { %v460_v12 = vpop.f32.mrf.mxu0  ;;  %v1226_v13 = vpop.f32.mrf.mxu1 }
 0x15c   :  { %861 = vst [vmem:[#allocation7 + $0x160] sm:$0xff] %v763_v8  ;;  %912 = vst [vmem:[#allocation7 + $0x2f8] sm:$0xff] %v814_v9  ;;  %v766_v14 = vmax.f32 %v466_v10, 0.0  ;;  %v813_v15 = vmax.f32 %v701_v11, 0.0  ;;  %v461_v16 = vadd.f32 %v1370_v50, %v460_v12  ;;  %v716_v17 = vadd.f32 %v1226_v13, %v1370_v50 }
 0x15d   :  { %v1154_v18 = vpop.f32.mrf.mxu0  ;;  %v710_v19 = vpop.f32.mrf.mxu1 }
 0x15e   :  { %864 = vst [vmem:[#allocation7 + $0x178] sm:$0xff] %v766_v14  ;;  %911 = vst [vmem:[#allocation7 + $0x2f0] sm:$0xff] %v813_v15  ;;  %v765_v20 = vmax.f32 %v461_v16, 0.0  ;;  %v816_v21 = vmax.f32 %v716_v17, 0.0  ;;  %v476_v22 = vadd.f32 %v1154_v18, %v1370_v50  ;;  %v711_v23 = vadd.f32 %v1370_v50, %v710_v19 }
 0x15f   :  { %v470_v24 = vpop.f32.mrf.mxu0 }
 0x160   :  { %863 = vst [vmem:[#allocation7 + $0x170] sm:$0xff] %v765_v20  ;;  %914 = vst [vmem:[#allocation7 + $0x308] sm:$0xff] %v816_v21  ;;  %v768_v25 = vmax.f32 %v476_v22, 0.0  ;;  %v815_v26 = vmax.f32 %v711_v23, 0.0  ;;  %v471_v27 = vadd.f32 %v1370_v50, %v470_v24 }
 0x162   :  { %866 = vst [vmem:[#allocation7 + $0x188] sm:$0xff] %v768_v25  ;;  %913 = vst [vmem:[#allocation7 + $0x300] sm:$0xff] %v815_v26  ;;  %v767_v28 = vmax.f32 %v471_v27, 0.0 }
 0x164   :  { %865 = vst [vmem:[#allocation7 + $0x180] sm:$0xff] %v767_v28 }
 0x165   :  { %1315 = shalt.err (!%p1312_p0)
}
 0x166   :  { %926 = dma.vmem_to_hbm [thread:$0]  %s921_s24, 12544, %s1479_s3, [#allocation4], %s1331_s15, %s1331_s15, %s1332_s16  }
 0x167   :  { %1328 = dma.done.wait [#allocation4], 12544  }
 0x168   :  { %1329 = vsyncadd [#allocation4], 4294954752 }
 0x169   :  { %930 = vsyncpa [#allocation3], 1 }
 0x16a   :  { %931 = vsyncpa [#allocation6], 1 }
 0x16b   :  { %932 = vsyncpa [#allocation4], 1 }

</bundles_post_ra>
